<compile_context>
chip_gen: v7x
topology: tpu7x:2x2x1
jax: 0.10.0
libtpu: 0.0.40
codegen_flags: <defaults>
</compile_context>

<pallas_src>
import functools

import jax
import jax.numpy as jnp
from jax.experimental import pallas as pl
from jax.experimental.pallas import tpu as pltpu


def _round_up(x, m):
    return ((x + m - 1) // m) * m


# ---------------------------------------------------------------------------
# Kernels
# ---------------------------------------------------------------------------
def _gap_matmul_kernel(x_ref, m_ref, o_ref, *, inv_hw):
    """x_ref: (rt, g*HW) tile; m_ref: (g*HW, g) block-diagonal ones.

    The per-segment sum is an MXU contraction (f32 accumulation); the 1/HW
    scale is applied once in f32 so the ones matrix stays exact in any dtype.
    """
    s = jnp.dot(x_ref[...], m_ref[...], preferred_element_type=jnp.float32)
    o_ref[...] = (s * inv_hw).astype(o_ref.dtype)


def _gap_accum_kernel(x_ref, o_ref, acc_ref, *, hw, hw_tile, inv_hw, needs_mask):
    """Huge-HW path: 2-D grid (rows, hw); f32 accumulator, init/finalize via pl.when."""
    k = pl.program_id(1)

    @pl.when(k == 0)
    def _():
        acc_ref[...] = jnp.zeros_like(acc_ref)

    x = x_ref[...]
    if needs_mask:
        # Last HW tile overhangs the array; zero the out-of-range columns so the
        # accumulated sum stays correct (row overhang is harmless & sliced off).
        col = jax.lax.broadcasted_iota(jnp.int32, x.shape, 1) + k * hw_tile
        x = jnp.where(col < hw, x, jnp.zeros_like(x))
    acc_ref[...] += jnp.sum(x, axis=-1, keepdims=True, dtype=jnp.float32)

    @pl.when(k == pl.num_programs(1) - 1)
    def _():
        o_ref[...] = (acc_ref[...] * inv_hw).astype(o_ref.dtype)


# ---------------------------------------------------------------------------
# Tiling heuristics
# ---------------------------------------------------------------------------
def _gen_params():
    """(target_tile_bytes, min_grid_steps) per TPU generation."""
    kind = ""
    try:
        kind = jax.devices()[0].device_kind.lower()
    except Exception:
        pass
    if "v7" in kind or "7x" in kind:
        return 12 << 20, 4   # 2 TensorCores x >=2 steps each
    if "v6" in kind:
        return 10 << 20, 1
    if "v5" in kind:
        return 6 << 20, 1    # smallest default scoped VMEM / lowest HBM BW
    return 8 << 20, 2


def _pick_fold(nc, hw, fold_threshold, max_fold_hw):
    """Largest divisor g of NC with g*HW <= max_fold_hw, minimizing lane padding."""
    if hw >= fold_threshold or nc <= 1:
        return 1
    best_g, best_frac = 1, float("inf")
    g = 1
    while g <= nc and g * hw <= max_fold_hw:
        if nc % g == 0:
            fhw = g * hw
            frac = _round_up(fhw, 128) / fhw
            if frac <= best_frac:          # ties -> prefer larger g (denser rows)
                best_g, best_frac = g, frac
        g += 1
    return best_g


def _pick_row_tile(rows, bytes_per_row, sublane, target_tile_bytes, min_steps):
    """Biggest aligned row tile within the PADDED per-step byte budget."""
    budget_rows = max(1, target_tile_bytes // max(bytes_per_row, 1))
    rt = min(budget_rows, rows)
    # Keep >= min_steps grid steps (v7x megacore pipelining), but only when each
    # step would still move a reasonable amount of data.
    if min_steps > 1 and rows * bytes_per_row >= min_steps * (2 << 20):
        rt = min(rt, pl.cdiv(rows, min_steps))
    if rt >= rows:
        return rows                         # single full block (any size legal)
    if rt >= sublane:
        return (rt // sublane) * sublane    # multi-block: sublane aligned
    return min(sublane, rows)


# ---------------------------------------------------------------------------
# Wrappers
# ---------------------------------------------------------------------------
def _gap_large_hw(x, NC, HW, dsize, sublane, target_tile_bytes, min_steps,
                  inv_hw, keep_dim, N, C):
    """Fallback for huge H*W: tile the HW axis and accumulate in f32 VMEM."""
    dtype = x.dtype
    x2 = x.reshape(NC, HW)

    rt = min(NC, 256)
    if rt >= sublane:
        rt = (rt // sublane) * sublane
    if min_steps > 1 and NC >= 2 * sublane:
        half = (pl.cdiv(NC, 2) // sublane) * sublane
        rt = min(rt, max(sublane, half))

    hw_tile = (target_tile_bytes // (max(_round_up(rt, sublane), sublane) * dsize))
    hw_tile = (hw_tile // 128) * 128
    hw_tile = max(128, min(hw_tile, _round_up(HW, 128)))

    num_row_tiles = pl.cdiv(NC, rt)
    num_hw_tiles = pl.cdiv(HW, hw_tile)
    padded_rows = num_row_tiles * rt
    needs_mask = (HW % hw_tile) != 0

    in_tile = _round_up(rt, sublane) * hw_tile * dsize
    out_tile = _round_up(rt, sublane) * 128 * dsize
    acc_bytes = _round_up(rt, sublane) * 128 * 4
    vmem_limit = max(2 * (in_tile + out_tile) + acc_bytes + (2 << 20), 24 << 20)

    out = pl.pallas_call(
        functools.partial(_gap_accum_kernel, hw=HW, hw_tile=hw_tile,
                          inv_hw=inv_hw, needs_mask=needs_mask),
        out_shape=jax.ShapeDtypeStruct((padded_rows, 1), dtype),
        grid_spec=pltpu.PrefetchScalarGridSpec(
            num_scalar_prefetch=0,
            grid=(num_row_tiles, num_hw_tiles),
            in_specs=[pl.BlockSpec((rt, hw_tile), lambda i, k: (i, k))],
            out_specs=pl.BlockSpec((rt, 1), lambda i, k: (i, 0)),
            scratch_shapes=[pltpu.VMEM((rt, 1), jnp.float32)],
        ),
        compiler_params=pltpu.CompilerParams(
            dimension_semantics=("parallel", "arbitrary"),
            vmem_limit_bytes=int(vmem_limit),
        ),
        cost_estimate=pl.CostEstimate(
            flops=NC * HW, transcendentals=0,
            bytes_accessed=NC * HW * dsize + NC * dsize),
    )(x2)

    flat = out[:NC, 0]
    return flat.reshape(N, C, 1, 1) if keep_dim else flat.reshape(N, C)


def custom_global_avg_pool2d(x, keep_dim=True, target_tile_bytes=None,
                             fold_threshold=512, max_fold_hw=2048):
    """x: (N, C, H, W). Mean over H and W, matching torch x.mean(3).mean(2)."""
    N, C, H, W = x.shape
    NC, HW = N * C, H * W
    dtype = x.dtype
    dsize = jnp.dtype(dtype).itemsize
    sublane = {4: 8, 2: 16, 1: 32}.get(dsize, 8)
    inv_hw = 1.0 / HW

    gen_target, min_steps = _gen_params()
    if target_tile_bytes is None:
        target_tile_bytes = gen_target

    # Lane-padded VMEM row size — the real per-row cost in VMEM.
    if sublane * _round_up(HW, 128) * dsize > target_tile_bytes:
        # Even a minimal-height full-HW block blows the budget -> 2-D grid path.
        return _gap_large_hw(x, NC, HW, dsize, sublane, target_tile_bytes,
                             min_steps, inv_hw, keep_dim, N, C)

    # ---- main path: full-(folded-)HW rows, MXU block-diagonal reduction ----
    g = _pick_fold(NC, HW, fold_threshold, max_fold_hw)
    rows = NC // g
    fold_hw = g * HW
    x2 = x.reshape(rows, fold_hw)            # contiguous reshape: no data movement

    bytes_per_row = _round_up(fold_hw, 128) * dsize   # PADDED budget (review fix)
    rt = _pick_row_tile(rows, bytes_per_row, sublane, target_tile_bytes, min_steps)
    num_tiles = pl.cdiv(rows, rt)
    padded_rows = num_tiles * rt             # only the tiny output is row-padded

    # Block-diagonal ones matrix (exact in any float dtype); 1/HW applied in f32.
    seg = jnp.arange(fold_hw, dtype=jnp.int32) // HW
    m = (seg[:, None] == jnp.arange(g, dtype=jnp.int32)[None, :]).astype(dtype)

    in_tile = _round_up(rt, sublane) * _round_up(fold_hw, 128) * dsize
    m_tile = _round_up(fold_hw, sublane) * _round_up(g, 128) * dsize
    out_tile = _round_up(rt, sublane) * _round_up(g, 128) * dsize
    vmem_limit = max(2 * (in_tile + m_tile + out_tile) + (2 << 20), 24 << 20)

    out = pl.pallas_call(
        functools.partial(_gap_matmul_kernel, inv_hw=inv_hw),
        out_shape=jax.ShapeDtypeStruct((padded_rows, g), dtype),
        grid_spec=pltpu.PrefetchScalarGridSpec(
            num_scalar_prefetch=0,
            grid=(num_tiles,),
            in_specs=[pl.BlockSpec((rt, fold_hw), lambda i: (i, 0)),
                      pl.BlockSpec((fold_hw, g), lambda i: (0, 0))],
            out_specs=pl.BlockSpec((rt, g), lambda i: (i, 0)),
        ),
        compiler_params=pltpu.CompilerParams(
            dimension_semantics=("parallel",),
            vmem_limit_bytes=int(vmem_limit),
        ),
        cost_estimate=pl.CostEstimate(
            flops=2 * NC * HW, transcendentals=0,
            bytes_accessed=NC * HW * dsize + NC * dsize + fold_hw * g * dsize),
    )(x2, m)

    # Overhanging rows of the last block hold garbage means; slice them off.
    flat = out[:rows].reshape(NC)
    return flat.reshape(N, C, 1, 1) if keep_dim else flat.reshape(N, C)


def _reference(x, keep_dim=True):
    r = x.mean(axis=3, keepdims=True).mean(axis=2, keepdims=True)
    return r if keep_dim else r.reshape(x.shape[0], x.shape[1])


if __name__ == "__main__":
    key = jax.random.PRNGKey(0)

    # Primary check: small shape from the module spec (folded MXU path, defaults).
    N, C, H, W = 2, 4, 16, 16
    x = jax.random.normal(key, (N, C, H, W), dtype=jnp.float32)

    y = custom_global_avg_pool2d(x, keep_dim=True)
    jax.block_until_ready(y)
    ref = _reference(x, keep_dim=True)
    assert y.shape == (N, C, 1, 1), y.shape
    assert jnp.allclose(y, ref, atol=1e-5, rtol=1e-5), "mismatch (keep_dim=True)"

    y2 = custom_global_avg_pool2d(x, keep_dim=False)
    jax.block_until_ready(y2)
    assert y2.shape == (N, C)
    assert jnp.allclose(y2, _reference(x, keep_dim=False), atol=1e-5, rtol=1e-5)

    # Folded multi-tile path: ResNet-style 7x7 GAP, forced small tiles.
    xa = jax.random.normal(jax.random.PRNGKey(1), (4, 256, 7, 7), dtype=jnp.float32)
    ya = custom_global_avg_pool2d(xa, keep_dim=True, target_tile_bytes=53248)
    jax.block_until_ready(ya)
    assert jnp.allclose(ya, _reference(xa, keep_dim=True), atol=1e-5, rtol=1e-5)

    # Unfolded (g=1) multi-tile path with row overhang on the last block.
    xb = jax.random.normal(jax.random.PRNGKey(2), (2, 100, 16, 32), dtype=jnp.float32)
    yb = custom_global_avg_pool2d(xb, keep_dim=False, target_tile_bytes=128 * 1024)
    jax.block_until_ready(yb)
    assert jnp.allclose(yb, _reference(xb, keep_dim=False), atol=1e-5, rtol=1e-5)

    # Huge-HW fallback path (2-D grid, f32 accumulator, column masking).
    xc = jax.random.normal(jax.random.PRNGKey(3), (2, 8, 20, 33), dtype=jnp.float32)
    yc = custom_global_avg_pool2d(xc, keep_dim=True, target_tile_bytes=16384)
    jax.block_until_ready(yc)
    assert jnp.allclose(yc, _reference(xc, keep_dim=True), atol=1e-5, rtol=1e-5)

    # TODO(synk): integer input dtypes would truncate on the final astype; the
    # module is only used with float activations so this is left as-is.
    print("KERNEL_OK")
</pallas_src>

<mosaic_0001>
module attributes {stable_mosaic.version = 11 : i64} {
  func.func @_gap_matmul_kernel(%arg0: i32, %arg1: memref<1x2048xf32, #tpu.memory_space<vmem>>, %arg2: memref<2048x8xf32, #tpu.memory_space<vmem>>, %arg3: memref<1x8xf32, #tpu.memory_space<vmem>>) attributes {dimension_semantics = [#tpu.dimension_semantics<parallel>], iteration_bounds = array<i64: 1>, scalar_prefetch = 0 : i64, scratch_operands = 0 : i64, tpu.core_type = #tpu.core_type<tc>, window_params = [{transform_indices = @transform_0, window_bounds = array<i64: 1, 2048>}, {pipeline_mode = #tpu.pipeline_mode<synchronous>, transform_indices = @transform_1, window_bounds = array<i64: 2048, 8>}, {transform_indices = @transform_2, window_bounds = array<i64: 1, 8>}]} {
    %c0 = arith.constant 0 : index
    %c0_0 = arith.constant 0 : index
    %0 = vector.load %arg1[%c0, %c0_0] : memref<1x2048xf32, #tpu.memory_space<vmem>>, vector<1x2048xf32>
    %c0_1 = arith.constant 0 : index
    %c0_2 = arith.constant 0 : index
    %1 = vector.load %arg2[%c0_1, %c0_2] : memref<2048x8xf32, #tpu.memory_space<vmem>>, vector<2048x8xf32>
    %cst = arith.constant dense<0.000000e+00> : vector<1x8xf32>
    %2 = tpu.matmul %0, %1, %cst {dimension_numbers = #tpu.dot_dimension_numbers<[1], [0], [0], [1], [0, 0, 1, 1], [], []>} : vector<1x2048xf32>, vector<2048x8xf32>, vector<1x8xf32> -> vector<1x8xf32>
    %cst_3 = arith.constant 3.906250e-03 : f32
    %3 = vector.broadcast %cst_3 : f32 to vector<1x8xf32>
    %4 = arith.mulf %2, %3 : vector<1x8xf32>
    %c0_4 = arith.constant 0 : index
    %c0_5 = arith.constant 0 : index
    %5 = vector.load %arg3[%c0_4, %c0_5] : memref<1x8xf32, #tpu.memory_space<vmem>>, vector<1x8xf32>
    tpu.vector_store %arg3[%c0_4, %c0_5], %4 {strides = array<i32>} : memref<1x8xf32, #tpu.memory_space<vmem>>, vector<1x8xf32>,
    return
  }
  func.func @transform_0(%arg0: i32) -> (i32, i32) {
    %c0_i32 = arith.constant 0 : i32
    %c0_i32_0 = arith.constant 0 : i32
    return %arg0, %c0_i32 : i32, i32
  }
  func.func @transform_1(%arg0: i32) -> (i32, i32) {
    %c0_i32 = arith.constant 0 : i32
    %c0_i32_0 = arith.constant 0 : i32
    %c0_i32_1 = arith.constant 0 : i32
    return %c0_i32, %c0_i32_0 : i32, i32
  }
  func.func @transform_2(%arg0: i32) -> (i32, i32) {
    %c0_i32 = arith.constant 0 : i32
    %c0_i32_0 = arith.constant 0 : i32
    return %arg0, %c0_i32 : i32, i32
  }
}

</mosaic_0001>

<bundles_post_ra>
// kernel: tpu_custom_call.1
= control target key start
LH: loop header
LB: loop body
LE: loop exit
PB: predicated region body
PF: predicated region fallthrough
CT: control target
= control target key end

     0   :  { %v272_v47 = vlaneseq  ;;  %s2354_s0 = inlined_call_operand.vmem [shape: f32[1,2048], index: 0, kind: input, shape index: {}]   ;;  %s2355_s1 = inlined_call_operand.vmem [shape: f32[2048,8], index: 1, kind: input, shape index: {}]   ;;  %s2356_s2 = inlined_call_operand.hbm [shape: f32[1,8], index: 2, kind: output, shape index: {}]  }
   0x1   :  { %v30_v0 = vld [vmem:[%s2355_s1 + $0x80] sm:$0xff]  ;;  %v31_v1 = vld [vmem:[%s2355_s1 + $0x88] sm:$0xff]  ;;  %v32_v11 = vld [vmem:[%s2355_s1 + $0x90] sm:$0xff] }
   0x2   :  { %v62_v2 = vld [vmem:[%s2355_s1 + $0x180] sm:$0xff]  ;;  %v1209_v3 = vpack.c.bf16 %v31_v1, %v30_v0  ;;  %v63_v4 = vld [vmem:[%s2355_s1 + $0x188] sm:$0xff]  ;;  %v33_v13 = vld [vmem:[%s2355_s1 + $0x98] sm:$0xff]  ;;  %v1632_v61 = vshrl.u32 %v272_v47, 7 }
   0x3   :  { %v14_v5 = vld [vmem:[%s2355_s1] sm:$0xff]  ;;  %v15_v6 = vld [vmem:[%s2355_s1 + $0x8] sm:$0xff]  ;;  %v1241_v7 = vpack.c.bf16 %v63_v4, %v62_v2  ;;  %v64_v14 = vld [vmem:[%s2355_s1 + $0x190] sm:$0xff]  ;;  %v1213_v16 = vpack.c.bf16 %v33_v13, %v32_v11 }
   0x4   :  { %v1211_v8 = vpack.c.bf16 %v15_v6, %v14_v5  ;;  %v46_v9 = vld [vmem:[%s2355_s1 + $0x100] sm:$0xff]  ;;  %v47_v10 = vld [vmem:[%s2355_s1 + $0x108] sm:$0xff]  ;;  %1210 = vmatprep.subr.bf16.mxu0 %v1209_v3  ;;  %v65_v15 = vld [vmem:[%s2355_s1 + $0x198] sm:$0xff]  ;;  %v286_v11 = vsub.s32 3, %v1632_v61 }
   0x5   :  { %v1243_v12 = vpack.c.bf16 %v47_v10, %v46_v9  ;;  %1242 = vmatprep.subr.bf16.mxu1 %v1241_v7  ;;  %v1245_v17 = vpack.c.bf16 %v65_v15, %v64_v14  ;;  %v16_v18 = vld [vmem:[%s2355_s1 + $0x10] sm:$0xff]  ;;  %v17_v19 = vld [vmem:[%s2355_s1 + $0x18] sm:$0xff]  ;;  %v34_v23 = vld [vmem:[%s2355_s1 + $0xa0] sm:$0xff]  ;;  %v278_v10 = vsub.s32 1, %v1632_v61 }
   0x6   :  { %1212 = vmatpush3.bf16.msra.mxu0 %v1211_v8  ;;  %v48_v20 = vld [vmem:[%s2355_s1 + $0x110] sm:$0xff]  ;;  %v1215_v21 = vpack.c.bf16 %v17_v19, %v16_v18  ;;  %v49_v22 = vld [vmem:[%s2355_s1 + $0x118] sm:$0xff]  ;;  %v35_v24 = vld [vmem:[%s2355_s1 + $0xa8] sm:$0xff] }
   0x7   :  { %1244 = vmatpush3.bf16.msra.mxu1 %v1243_v12  ;;  %1214 = vmatprep.subr.bf16.mxu0 %v1213_v16  ;;  %v1247_v25 = vpack.c.bf16 %v49_v22, %v48_v20  ;;  %v1217_v26 = vpack.c.bf16 %v35_v24, %v34_v23  ;;  %v66_v27 = vld [vmem:[%s2355_s1 + $0x1a0] sm:$0xff]  ;;  %v67_v28 = vld [vmem:[%s2355_s1 + $0x1a8] sm:$0xff]  ;;  %v36_v35 = vld [vmem:[%s2355_s1 + $0xb0] sm:$0xff] }
   0x8   :  { %1246 = vmatprep.subr.bf16.mxu1 %v1245_v17  ;;  %v18_v29 = vld [vmem:[%s2355_s1 + $0x20] sm:$0xff]  ;;  %v1249_v30 = vpack.c.bf16 %v67_v28, %v66_v27  ;;  %v19_v31 = vld [vmem:[%s2355_s1 + $0x28] sm:$0xff]  ;;  %v37_v36 = vld [vmem:[%s2355_s1 + $0xb8] sm:$0xff] }
   0x9   :  { %v50_v32 = vld [vmem:[%s2355_s1 + $0x120] sm:$0xff]  ;;  %v51_v33 = vld [vmem:[%s2355_s1 + $0x128] sm:$0xff]  ;;  %v1219_v34 = vpack.c.bf16 %v19_v31, %v18_v29  ;;  %v68_v37 = vld [vmem:[%s2355_s1 + $0x1b0] sm:$0xff]  ;;  %v1221_v39 = vpack.c.bf16 %v37_v36, %v36_v35 }
   0xa   :  { %1216 = vmatpush3.bf16.msra.mxu0 %v1215_v21  ;;  %v1251_v38 = vpack.c.bf16 %v51_v33, %v50_v32  ;;  %v69_v40 = vld [vmem:[%s2355_s1 + $0x1b8] sm:$0xff]  ;;  %v20_v41 = vld [vmem:[%s2355_s1 + $0x30] sm:$0xff]  ;;  %v38_v46 = vld [vmem:[%s2355_s1 + $0xc0] sm:$0xff] }
   0xb   :  { %1248 = vmatpush3.bf16.msra.mxu1 %v1247_v25  ;;  %1218 = vmatprep.subr.bf16.mxu0 %v1217_v26  ;;  %v21_v42 = vld [vmem:[%s2355_s1 + $0x38] sm:$0xff]  ;;  %v1253_v43 = vpack.c.bf16 %v69_v40, %v68_v37  ;;  %v52_v44 = vld [vmem:[%s2355_s1 + $0x130] sm:$0xff]  ;;  %v39_v48 = vld [vmem:[%s2355_s1 + $0xc8] sm:$0xff] }
   0xc   :  { %1250 = vmatprep.subr.bf16.mxu1 %v1249_v30  ;;  %v53_v45 = vld [vmem:[%s2355_s1 + $0x138] sm:$0xff]  ;;  %v70_v49 = vld [vmem:[%s2355_s1 + $0x1c0] sm:$0xff]  ;;  %v71_v50 = vld [vmem:[%s2355_s1 + $0x1c8] sm:$0xff]  ;;  %v1223_v51 = vpack.c.bf16 %v21_v42, %v20_v41  ;;  %v1225_v53 = vpack.c.bf16 %v39_v48, %v38_v46 }
   0xd   :  { %v1255_v52 = vpack.c.bf16 %v53_v45, %v52_v44  ;;  %v22_v54 = vld [vmem:[%s2355_s1 + $0x40] sm:$0xff]  ;;  %v23_v55 = vld [vmem:[%s2355_s1 + $0x48] sm:$0xff]  ;;  %v1257_v57 = vpack.c.bf16 %v71_v50, %v70_v49  ;;  %v40_v59 = vld [vmem:[%s2355_s1 + $0xd0] sm:$0xff] }
   0xe   :  { %1220 = vmatpush3.bf16.msra.mxu0 %v1219_v34  ;;  %v54_v56 = vld [vmem:[%s2355_s1 + $0x140] sm:$0xff]  ;;  %v55_v58 = vld [vmem:[%s2355_s1 + $0x148] sm:$0xff]  ;;  %v41_v60 = vld [vmem:[%s2355_s1 + $0xd8] sm:$0xff]  ;;  %v1227_v0 = vpack.c.bf16 %v23_v55, %v22_v54 }
   0xf   :  { %1252 = vmatpush3.bf16.msra.mxu1 %v1251_v38  ;;  %1222 = vmatprep.subr.bf16.mxu0 %v1221_v39  ;;  %v72_v62 = vld [vmem:[%s2355_s1 + $0x1d0] sm:$0xff]  ;;  %v73_v63 = vld [vmem:[%s2355_s1 + $0x1d8] sm:$0xff]  ;;  %v1259_v1 = vpack.c.bf16 %v55_v58, %v54_v56  ;;  %v1229_v2 = vpack.c.bf16 %v41_v60, %v40_v59  ;;  %v42_v8 = vld [vmem:[%s2355_s1 + $0xe0] sm:$0xff]  ;;  %v274_v39 = vsub.s32 0, %v1632_v61 }
  0x10   :  { %1254 = vmatprep.subr.bf16.mxu1 %v1253_v43  ;;  %v24_v3 = vld [vmem:[%s2355_s1 + $0x50] sm:$0xff]  ;;  %v25_v4 = vld [vmem:[%s2355_s1 + $0x58] sm:$0xff]  ;;  %v1261_v6 = vpack.c.bf16 %v73_v63, %v72_v62  ;;  %v43_v9 = vld [vmem:[%s2355_s1 + $0xe8] sm:$0xff]  ;;  %v282_v43 = vsub.s32 2, %v1632_v61 }
  0x11   :  { %v56_v5 = vld [vmem:[%s2355_s1 + $0x150] sm:$0xff]  ;;  %v57_v7 = vld [vmem:[%s2355_s1 + $0x158] sm:$0xff]  ;;  %v74_v12 = vld [vmem:[%s2355_s1 + $0x1e0] sm:$0xff]  ;;  %v1231_v14 = vpack.c.bf16 %v25_v4, %v24_v3  ;;  %v1233_v17 = vpack.c.bf16 %v43_v9, %v42_v8 }
  0x12   :  { %1224 = vmatpush3.bf16.msra.mxu0 %v1223_v51  ;;  %v75_v13 = vld [vmem:[%s2355_s1 + $0x1e8] sm:$0xff]  ;;  %v26_v15 = vld [vmem:[%s2355_s1 + $0x60] sm:$0xff]  ;;  %v1263_v16 = vpack.c.bf16 %v57_v7, %v56_v5  ;;  %v44_v23 = vld [vmem:[%s2355_s1 + $0xf0] sm:$0xff] }
  0x13   :  { %1256 = vmatpush3.bf16.msra.mxu1 %v1255_v52  ;;  %1226 = vmatprep.subr.bf16.mxu0 %v1225_v53  ;;  %v27_v18 = vld [vmem:[%s2355_s1 + $0x68] sm:$0xff]  ;;  %v58_v19 = vld [vmem:[%s2355_s1 + $0x160] sm:$0xff]  ;;  %v1265_v21 = vpack.c.bf16 %v75_v13, %v74_v12  ;;  %v45_v24 = vld [vmem:[%s2355_s1 + $0xf8] sm:$0xff]  ;;  %v294_v53 = vsub.s32 5, %v1632_v61 }
  0x14   :  { %1258 = vmatprep.subr.bf16.mxu1 %v1257_v57  ;;  %v1678_v20 = vld [vmem:[%s2354_s0] sm:$0xff]  ;;  %v59_v22 = vld [vmem:[%s2355_s1 + $0x168] sm:$0xff]  ;;  %v76_v27 = vld [vmem:[%s2355_s1 + $0x1f0] sm:$0xff]  ;;  %v1235_v29 = vpack.c.bf16 %v27_v18, %v26_v15  ;;  %v1237_v31 = vpack.c.bf16 %v45_v24, %v44_v23  ;;  %v302_v57 = vsub.s32 7, %v1632_v61 }
  0x15   :  { %v279_v25 = vrot.slane %v1678_v20, %v278_v10  ;;  %v287_v26 = vrot.slane %v1678_v20, %v286_v11  ;;  %v77_v28 = vld [vmem:[%s2355_s1 + $0x1f8] sm:$0xff]  ;;  %v1267_v30 = vpack.c.bf16 %v59_v22, %v58_v19  ;;  %v28_v32 = vld [vmem:[%s2355_s1 + $0x70] sm:$0xff]  ;;  %v94_v37 = vld [vmem:[%s2355_s1 + $0x280] sm:$0xff]  ;;  %v275_v54 = vrot.slane %v1678_v20, %v274_v39 }
  0x16   :  { %1228 = vmatpush3.bf16.msra.mxu0 %v1227_v0  ;;  %v29_v33 = vld [vmem:[%s2355_s1 + $0x78] sm:$0xff]  ;;  %v60_v34 = vld [vmem:[%s2355_s1 + $0x170] sm:$0xff]  ;;  %v1269_v35 = vpack.c.bf16 %v77_v28, %v76_v27  ;;  %v95_v38 = vld [vmem:[%s2355_s1 + $0x288] sm:$0xff]  ;;  %v283_v58 = vrot.slane %v1678_v20, %v282_v43  ;;  %v303_v9 = vrot.slane %v1678_v20, %v302_v57 }
  0x17   :  { %1260 = vmatpush3.bf16.msra.mxu1 %v1259_v1  ;;  %1230 = vmatprep.subr.bf16.mxu0 %v1229_v2  ;;  %v61_v36 = vld [vmem:[%s2355_s1 + $0x178] sm:$0xff]  ;;  %v126_v40 = vld [vmem:[%s2355_s1 + $0x380] sm:$0xff]  ;;  %v127_v41 = vld [vmem:[%s2355_s1 + $0x388] sm:$0xff]  ;;  %v1239_v42 = vpack.c.bf16 %v29_v33, %v28_v32  ;;  %v1273_v45 = vpack.c.bf16 %v95_v38, %v94_v37 }
  0x18   :  { %1262 = vmatprep.subr.bf16.mxu1 %v1261_v6  ;;  %416 = vmatprep.mubr.f32.mxu0 %v279_v25  ;;  %v1271_v44 = vpack.c.bf16 %v61_v36, %v60_v34  ;;  %v78_v46 = vld [vmem:[%s2355_s1 + $0x200] sm:$0xff]  ;;  %v79_v47 = vld [vmem:[%s2355_s1 + $0x208] sm:$0xff]  ;;  %v1305_v49 = vpack.c.bf16 %v127_v41, %v126_v40  ;;  %v96_v51 = vld [vmem:[%s2355_s1 + $0x290] sm:$0xff]  ;;  %v295_v6 = vrot.slane %v1678_v20, %v294_v53 }
  0x19   :  { %486 = vmatprep.mubr.f32.mxu1 %v287_v26  ;;  %v110_v48 = vld [vmem:[%s2355_s1 + $0x300] sm:$0xff]  ;;  %v111_v50 = vld [vmem:[%s2355_s1 + $0x308] sm:$0xff]  ;;  %v97_v52 = vld [vmem:[%s2355_s1 + $0x298] sm:$0xff]  ;;  %v1275_v59 = vpack.c.bf16 %v79_v47, %v78_v46 }
  0x1a   :  { %1232 = vmatpush3.bf16.msra.mxu0 %v1231_v14  ;;  %v128_v55 = vld [vmem:[%s2355_s1 + $0x390] sm:$0xff]  ;;  %v129_v56 = vld [vmem:[%s2355_s1 + $0x398] sm:$0xff]  ;;  %v1307_v60 = vpack.c.bf16 %v111_v50, %v110_v48  ;;  %v1277_v62 = vpack.c.bf16 %v97_v52, %v96_v51  ;;  %v98_v4 = vld [vmem:[%s2355_s1 + $0x2a0] sm:$0xff] }
  0x1b   :  { %1264 = vmatpush3.bf16.msra.mxu1 %v1263_v16  ;;  %1234 = vmatprep.subr.bf16.mxu0 %v1233_v17  ;;  %v80_v63 = vld [vmem:[%s2355_s1 + $0x210] sm:$0xff]  ;;  %v81_v0 = vld [vmem:[%s2355_s1 + $0x218] sm:$0xff]  ;;  %v1309_v2 = vpack.c.bf16 %v129_v56, %v128_v55  ;;  %v99_v5 = vld [vmem:[%s2355_s1 + $0x2a8] sm:$0xff] }
  0x1c   :  { %1266 = vmatprep.subr.bf16.mxu1 %v1265_v21  ;;  %v112_v1 = vld [vmem:[%s2355_s1 + $0x310] sm:$0xff]  ;;  %v113_v3 = vld [vmem:[%s2355_s1 + $0x318] sm:$0xff]  ;;  %v130_v7 = vld [vmem:[%s2355_s1 + $0x3a0] sm:$0xff]  ;;  %v1279_v12 = vpack.c.bf16 %v81_v0, %v80_v63  ;;  %v1281_v14 = vpack.c.bf16 %v99_v5, %v98_v4 }
  0x1d   :  { %v131_v8 = vld [vmem:[%s2355_s1 + $0x3a8] sm:$0xff]  ;;  %v1311_v13 = vpack.c.bf16 %v113_v3, %v112_v1  ;;  %v82_v15 = vld [vmem:[%s2355_s1 + $0x220] sm:$0xff]  ;;  %v100_v21 = vld [vmem:[%s2355_s1 + $0x2b0] sm:$0xff] }
  0x1e   :  { %1236 = vmatpush3.bf16.msra.mxu0 %v1235_v29  ;;  %v83_v16 = vld [vmem:[%s2355_s1 + $0x228] sm:$0xff]  ;;  %v114_v17 = vld [vmem:[%s2355_s1 + $0x320] sm:$0xff]  ;;  %v1313_v18 = vpack.c.bf16 %v131_v8, %v130_v7  ;;  %v101_v22 = vld [vmem:[%s2355_s1 + $0x2b8] sm:$0xff] }
  0x1f   :  { %1268 = vmatpush3.bf16.msra.mxu1 %v1267_v30  ;;  %1238 = vmatprep.subr.bf16.mxu0 %v1237_v31  ;;  %v115_v19 = vld [vmem:[%s2355_s1 + $0x328] sm:$0xff]  ;;  %v132_v23 = vld [vmem:[%s2355_s1 + $0x3b0] sm:$0xff]  ;;  %v133_v24 = vld [vmem:[%s2355_s1 + $0x3b8] sm:$0xff]  ;;  %v1283_v25 = vpack.c.bf16 %v83_v16, %v82_v15  ;;  %v1285_v27 = vpack.c.bf16 %v101_v22, %v100_v21 }
  0x20   :  { %1270 = vmatprep.subr.bf16.mxu1 %v1269_v35  ;;  %v1315_v26 = vpack.c.bf16 %v115_v19, %v114_v17  ;;  %v84_v28 = vld [vmem:[%s2355_s1 + $0x230] sm:$0xff]  ;;  %v85_v29 = vld [vmem:[%s2355_s1 + $0x238] sm:$0xff]  ;;  %v1317_v31 = vpack.c.bf16 %v133_v24, %v132_v23  ;;  %v102_v33 = vld [vmem:[%s2355_s1 + $0x2c0] sm:$0xff] }
  0x21   :  { %v116_v30 = vld [vmem:[%s2355_s1 + $0x330] sm:$0xff]  ;;  %v117_v32 = vld [vmem:[%s2355_s1 + $0x338] sm:$0xff]  ;;  %v103_v34 = vld [vmem:[%s2355_s1 + $0x2c8] sm:$0xff]  ;;  %v1287_v37 = vpack.c.bf16 %v85_v29, %v84_v28 }
  0x22   :  { %1240 = vmatpush3.bf16.msra.mxu0 %v1239_v42  ;;  %v134_v35 = vld [vmem:[%s2355_s1 + $0x3c0] sm:$0xff]  ;;  %v135_v36 = vld [vmem:[%s2355_s1 + $0x3c8] sm:$0xff]  ;;  %v1319_v38 = vpack.c.bf16 %v117_v32, %v116_v30  ;;  %v1289_v40 = vpack.c.bf16 %v103_v34, %v102_v33  ;;  %v104_v47 = vld [vmem:[%s2355_s1 + $0x2d0] sm:$0xff] }
  0x23   :  { %1272 = vmatpush3.bf16.msra.mxu1 %v1271_v44  ;;  %1274 = vmatprep.subr.bf16.mxu0 %v1273_v45  ;;  %v86_v41 = vld [vmem:[%s2355_s1 + $0x240] sm:$0xff]  ;;  %v87_v42 = vld [vmem:[%s2355_s1 + $0x248] sm:$0xff]  ;;  %v1321_v45 = vpack.c.bf16 %v135_v36, %v134_v35  ;;  %v105_v48 = vld [vmem:[%s2355_s1 + $0x2d8] sm:$0xff] }
  0x24   :  { %1306 = vmatprep.subr.bf16.mxu1 %v1305_v49  ;;  %v118_v44 = vld [vmem:[%s2355_s1 + $0x340] sm:$0xff]  ;;  %v119_v46 = vld [vmem:[%s2355_s1 + $0x348] sm:$0xff]  ;;  %v136_v49 = vld [vmem:[%s2355_s1 + $0x3d0] sm:$0xff]  ;;  %v1291_v51 = vpack.c.bf16 %v87_v42, %v86_v41 }
  0x25   :  { %417 = vmatmul.mubr.f32.vlgmr.msra.gmra.mrb[0].mxu0 %v275_v54  ;;  %v137_v50 = vld [vmem:[%s2355_s1 + $0x3d8] sm:$0xff]  ;;  %v1323_v52 = vpack.c.bf16 %v119_v46, %v118_v44  ;;  %v1293_v54 = vpack.c.bf16 %v105_v48, %v104_v47  ;;  %v88_v55 = vld [vmem:[%s2355_s1 + $0x250] sm:$0xff]  ;;  %v107_v63 = vld [vmem:[%s2355_s1 + $0x2e8] sm:$0xff] }
  0x26   :  { %487 = vmatmul.mubr.f32.vlgmr.msra.gmra.mrb[0].mxu1 %v283_v58  ;;  %1276 = vmatpush3.bf16.msra.mxu0 %v1275_v59  ;;  %v89_v56 = vld [vmem:[%s2355_s1 + $0x258] sm:$0xff]  ;;  %v120_v58 = vld [vmem:[%s2355_s1 + $0x350] sm:$0xff]  ;;  %v1325_v59 = vpack.c.bf16 %v137_v50, %v136_v49  ;;  %v138_v0 = vld [vmem:[%s2355_s1 + $0x3e0] sm:$0xff] }
  0x27   :  { %1308 = vmatpush3.bf16.msra.mxu1 %v1307_v60  ;;  %1278 = vmatprep.subr.bf16.mxu0 %v1277_v62  ;;  %v121_v60 = vld [vmem:[%s2355_s1 + $0x358] sm:$0xff]  ;;  %v106_v62 = vld [vmem:[%s2355_s1 + $0x2e0] sm:$0xff]  ;;  %v139_v1 = vld [vmem:[%s2355_s1 + $0x3e8] sm:$0xff] }
  0x28   :  { %1310 = vmatprep.subr.bf16.mxu1 %v1309_v2  ;;  %556 = vmatprep.mubr.f32.mxu0 %v295_v6  ;;  %v1295_v2 = vpack.c.bf16 %v89_v56, %v88_v55  ;;  %v1327_v3 = vpack.c.bf16 %v121_v60, %v120_v58  ;;  %v1297_v4 = vpack.c.bf16 %v107_v63, %v106_v62  ;;  %v90_v5 = vld [vmem:[%s2355_s1 + $0x260] sm:$0xff]  ;;  %v91_v6 = vld [vmem:[%s2355_s1 + $0x268] sm:$0xff]  ;;  %v141_v15 = vld [vmem:[%s2355_s1 + $0x3f8] sm:$0xff] }
  0x29   :  { %626 = vmatprep.mubr.f32.mxu1 %v303_v9  ;;  %v122_v7 = vld [vmem:[%s2355_s1 + $0x360] sm:$0xff]  ;;  %v1329_v8 = vpack.c.bf16 %v139_v1, %v138_v0  ;;  %v123_v9 = vld [vmem:[%s2355_s1 + $0x368] sm:$0xff]  ;;  %v1299_v16 = vpack.c.bf16 %v91_v6, %v90_v5  ;;  %v92_v19 = vld [vmem:[%s2355_s1 + $0x270] sm:$0xff] }
  0x2a   :  { %1280 = vmatpush3.bf16.msra.mxu0 %v1279_v12  ;;  %v108_v12 = vld [vmem:[%s2355_s1 + $0x2f0] sm:$0xff]  ;;  %v1331_v17 = vpack.c.bf16 %v123_v9, %v122_v7  ;;  %v93_v21 = vld [vmem:[%s2355_s1 + $0x278] sm:$0xff]  ;;  %v190_v28 = vld [vmem:[%s2355_s1 + $0x580] sm:$0xff] }
  0x2b   :  { %1312 = vmatpush3.bf16.msra.mxu1 %v1311_v13  ;;  %1282 = vmatprep.subr.bf16.mxu0 %v1281_v14  ;;  %v109_v13 = vld [vmem:[%s2355_s1 + $0x2f8] sm:$0xff]  ;;  %v140_v14 = vld [vmem:[%s2355_s1 + $0x3f0] sm:$0xff]  ;;  %v191_v29 = vld [vmem:[%s2355_s1 + $0x588] sm:$0xff]  ;;  %v1303_v30 = vpack.c.bf16 %v93_v21, %v92_v19 }
  0x2c   :  { %1314 = vmatprep.subr.bf16.mxu1 %v1313_v18  ;;  %v1301_v18 = vpack.c.bf16 %v109_v13, %v108_v12  ;;  %v124_v22 = vld [vmem:[%s2355_s1 + $0x370] sm:$0xff]  ;;  %v1333_v23 = vpack.c.bf16 %v141_v15, %v140_v14  ;;  %v125_v24 = vld [vmem:[%s2355_s1 + $0x378] sm:$0xff]  ;;  %v142_v34 = vld [vmem:[%s2355_s1 + $0x400] sm:$0xff] }
  0x2d   :  { %v1335_v32 = vpack.c.bf16 %v125_v24, %v124_v22  ;;  %v143_v35 = vld [vmem:[%s2355_s1 + $0x408] sm:$0xff]  ;;  %v174_v36 = vld [vmem:[%s2355_s1 + $0x500] sm:$0xff]  ;;  %v161_v41 = vld [vmem:[%s2355_s1 + $0x498] sm:$0xff] }
  0x2e   :  { %1284 = vmatpush3.bf16.msra.mxu0 %v1283_v25  ;;  %v158_v25 = vld [vmem:[%s2355_s1 + $0x480] sm:$0xff]  ;;  %v192_v44 = vld [vmem:[%s2355_s1 + $0x590] sm:$0xff]  ;;  %v1339_v46 = vpack.c.bf16 %v143_v35, %v142_v34  ;;  %v1968_v48 = vld [vmem:[%s2354_s0 + $0x8] sm:$0xff] }
  0x2f   :  { %1316 = vmatpush3.bf16.msra.mxu1 %v1315_v26  ;;  %1286 = vmatprep.subr.bf16.mxu0 %v1285_v27  ;;  %v159_v26 = vld [vmem:[%s2355_s1 + $0x488] sm:$0xff]  ;;  %v290_v27 = vsub.s32 4, %v1632_v61  ;;  %v177_v55 = vld [vmem:[%s2355_s1 + $0x518] sm:$0xff]  ;;  %v162_v56 = vld [vmem:[%s2355_s1 + $0x4a0] sm:$0xff]  ;;  %v319_v63 = vrot.slane %v1968_v48, %v286_v11 }
  0x30   :  { %1318 = vmatprep.subr.bf16.mxu1 %v1317_v31  ;;  %v298_v31 = vsub.s32 6, %v1632_v61  ;;  %v1337_v33 = vpack.c.bf16 %v159_v26, %v158_v25  ;;  %v163_v58 = vld [vmem:[%s2355_s1 + $0x4a8] sm:$0xff]  ;;  %v194_v60 = vld [vmem:[%s2355_s1 + $0x5a0] sm:$0xff]  ;;  %v164_v6 = vld [vmem:[%s2355_s1 + $0x4b0] sm:$0xff] }
  0x31   :  { %v291_v42 = vrot.slane %v1678_v20, %v290_v27  ;;  %v195_v62 = vld [vmem:[%s2355_s1 + $0x5a8] sm:$0xff]  ;;  %v165_v7 = vld [vmem:[%s2355_s1 + $0x4b8] sm:$0xff]  ;;  %v148_v15 = vld [vmem:[%s2355_s1 + $0x430] sm:$0xff] }
  0x32   :  { %1288 = vmatpush3.bf16.msra.mxu0 %v1287_v37  ;;  %v1369_v37 = vpack.c.bf16 %v191_v29, %v190_v28  ;;  %v299_v47 = vrot.slane %v1678_v20, %v298_v31  ;;  %v176_v20 = vld [vmem:[%s2355_s1 + $0x510] sm:$0xff]  ;;  %v1377_v11 = vpack.c.bf16 %v195_v62, %v194_v60  ;;  %v179_v5 = vld [vmem:[%s2355_s1 + $0x528] sm:$0xff]  ;;  %v197_v9 = vld [vmem:[%s2355_s1 + $0x5b8] sm:$0xff]  ;;  %v1349_v14 = vpack.c.bf16 %v165_v7, %v164_v6 }
  0x33   :  { %1320 = vmatpush3.bf16.msra.mxu1 %v1319_v38  ;;  %1290 = vmatprep.subr.bf16.mxu0 %v1289_v40  ;;  %v175_v38 = vld [vmem:[%s2355_s1 + $0x508] sm:$0xff]  ;;  %v160_v40 = vld [vmem:[%s2355_s1 + $0x490] sm:$0xff]  ;;  %v1375_v1 = vpack.c.bf16 %v177_v55, %v176_v20  ;;  %v181_v19 = vld [vmem:[%s2355_s1 + $0x538] sm:$0xff] }
  0x34   :  { %1322 = vmatprep.subr.bf16.mxu1 %v1321_v45  ;;  %v193_v45 = vld [vmem:[%s2355_s1 + $0x598] sm:$0xff]  ;;  %v1371_v49 = vpack.c.bf16 %v175_v38, %v174_v36  ;;  %v1341_v50 = vpack.c.bf16 %v161_v41, %v160_v40  ;;  %v166_v21 = vld [vmem:[%s2355_s1 + $0x4c0] sm:$0xff]  ;;  %v167_v22 = vld [vmem:[%s2355_s1 + $0x4c8] sm:$0xff] }
  0x35   :  { %v199_v24 = vld [vmem:[%s2355_s1 + $0x5c8] sm:$0xff]  ;;  %v1353_v28 = vpack.c.bf16 %v167_v22, %v166_v21  ;;  %v150_v29 = vld [vmem:[%s2355_s1 + $0x440] sm:$0xff]  ;;  %v168_v35 = vld [vmem:[%s2355_s1 + $0x4d0] sm:$0xff] }
  0x36   :  { %1292 = vmatpush3.bf16.msra.mxu0 %v1291_v51  ;;  %v144_v51 = vld [vmem:[%s2355_s1 + $0x410] sm:$0xff]  ;;  %v183_v34 = vld [vmem:[%s2355_s1 + $0x548] sm:$0xff]  ;;  %v169_v36 = vld [vmem:[%s2355_s1 + $0x4d8] sm:$0xff] }
  0x37   :  { %1324 = vmatpush3.bf16.msra.mxu1 %v1323_v52  ;;  %1294 = vmatprep.subr.bf16.mxu0 %v1293_v54  ;;  %v145_v52 = vld [vmem:[%s2355_s1 + $0x418] sm:$0xff]  ;;  %v1373_v54 = vpack.c.bf16 %v193_v45, %v192_v44  ;;  %v152_v44 = vld [vmem:[%s2355_s1 + $0x450] sm:$0xff]  ;;  %v203_v20 = vld [vmem:[%s2355_s1 + $0x5e8] sm:$0xff] }
  0x38   :  { %1326 = vmatprep.subr.bf16.mxu1 %v1325_v59  ;;  %v311_v59 = vrot.slane %v1968_v48, %v278_v10  ;;  %v1343_v0 = vpack.c.bf16 %v145_v52, %v144_v51  ;;  %v1345_v10 = vpack.c.bf16 %v163_v58, %v162_v56  ;;  %v201_v38 = vld [vmem:[%s2355_s1 + $0x5d8] sm:$0xff]  ;;  %v171_v51 = vld [vmem:[%s2355_s1 + $0x4e8] sm:$0xff]  ;;  %v202_v52 = vld [vmem:[%s2355_s1 + $0x5e0] sm:$0xff] }
  0x39   :  { %v153_v45 = vld [vmem:[%s2355_s1 + $0x458] sm:$0xff]  ;;  %v154_v55 = vld [vmem:[%s2355_s1 + $0x460] sm:$0xff]  ;;  %v187_v62 = vld [vmem:[%s2355_s1 + $0x568] sm:$0xff] }
  0x3a   :  { %1296 = vmatpush3.bf16.msra.mxu0 %v1295_v2  ;;  %v146_v2 = vld [vmem:[%s2355_s1 + $0x420] sm:$0xff] }
  0x3b   :  { %1328 = vmatpush3.bf16.msra.mxu1 %v1327_v3  ;;  %1298 = vmatprep.subr.bf16.mxu0 %v1297_v4  ;;  %v147_v3 = vld [vmem:[%s2355_s1 + $0x428] sm:$0xff]  ;;  %v178_v4 = vld [vmem:[%s2355_s1 + $0x520] sm:$0xff] }
  0x3c   :  { %1330 = vmatprep.subr.bf16.mxu1 %v1329_v8  ;;  %v196_v8 = vld [vmem:[%s2355_s1 + $0x5b0] sm:$0xff]  ;;  %v1347_v12 = vpack.c.bf16 %v147_v3, %v146_v2  ;;  %v1379_v13 = vpack.c.bf16 %v179_v5, %v178_v4  ;;  %v186_v60 = vld [vmem:[%s2355_s1 + $0x560] sm:$0xff] }
  0x3e   :  { %1300 = vmatpush3.bf16.msra.mxu0 %v1299_v16  ;;  %v149_v16 = vld [vmem:[%s2355_s1 + $0x438] sm:$0xff] }
  0x3f   :  { %1332 = vmatpush3.bf16.msra.mxu1 %v1331_v17  ;;  %1302 = vmatprep.subr.bf16.mxu0 %v1301_v18  ;;  %v180_v17 = vld [vmem:[%s2355_s1 + $0x530] sm:$0xff]  ;;  %v1381_v18 = vpack.c.bf16 %v197_v9, %v196_v8  ;;  %v1351_v25 = vpack.c.bf16 %v149_v16, %v148_v15 }
  0x40   :  { %1334 = vmatprep.subr.bf16.mxu1 %v1333_v23  ;;  %v198_v23 = vld [vmem:[%s2355_s1 + $0x5c0] sm:$0xff]  ;;  %v1383_v26 = vpack.c.bf16 %v181_v19, %v180_v17 }
  0x42   :  { %1304 = vmatpush3.bf16.msra.mxu0 %v1303_v30  ;;  %v151_v30 = vld [vmem:[%s2355_s1 + $0x448] sm:$0xff] }
  0x43   :  { %1336 = vmatpush3.bf16.msra.mxu1 %v1335_v32  ;;  %1338 = vmatprep.subr.bf16.mxu0 %v1337_v33  ;;  %v182_v32 = vld [vmem:[%s2355_s1 + $0x540] sm:$0xff]  ;;  %v1385_v33 = vpack.c.bf16 %v199_v24, %v198_v23  ;;  %v1355_v40 = vpack.c.bf16 %v151_v30, %v150_v29 }
  0x44   :  { %1370 = vmatprep.subr.bf16.mxu1 %v1369_v37  ;;  %v200_v37 = vld [vmem:[%s2355_s1 + $0x5d0] sm:$0xff]  ;;  %v1387_v41 = vpack.c.bf16 %v183_v34, %v182_v32 }
  0x45   :  { %557 = vmatmul.mubr.f32.vlgmr.msra.gmra.mrb[2].mxu0 %v291_v42  ;;  %v1357_v42 = vpack.c.bf16 %v169_v36, %v168_v35 }
  0x46   :  { %1340 = vmatpush3.bf16.msra.mxu0 %v1339_v46  ;;  %627 = vmatmul.mubr.f32.vlgmr.msra.gmra.mrb[2].mxu1 %v299_v47  ;;  %v184_v46 = vld [vmem:[%s2355_s1 + $0x550] sm:$0xff]  ;;  %v1389_v47 = vpack.c.bf16 %v201_v38, %v200_v37 }
  0x47   :  { %1372 = vmatpush3.bf16.msra.mxu1 %v1371_v49  ;;  %1342 = vmatprep.subr.bf16.mxu0 %v1341_v50  ;;  %v185_v49 = vld [vmem:[%s2355_s1 + $0x558] sm:$0xff]  ;;  %v170_v50 = vld [vmem:[%s2355_s1 + $0x4e0] sm:$0xff] }
  0x48   :  { %1374 = vmatprep.subr.bf16.mxu1 %v1373_v54  ;;  %696 = vmatprep.mubr.f32.mxu0 %v311_v59  ;;  %v1359_v54 = vpack.c.bf16 %v153_v45, %v152_v44  ;;  %v1391_v56 = vpack.c.bf16 %v185_v49, %v184_v46  ;;  %v1361_v58 = vpack.c.bf16 %v171_v51, %v170_v50  ;;  %v155_v59 = vld [vmem:[%s2355_s1 + $0x468] sm:$0xff] }
  0x49   :  { %766 = vmatprep.mubr.f32.mxu1 %v319_v63  ;;  %v1393_v63 = vpack.c.bf16 %v203_v20, %v202_v52 }
  0x4a   :  { %1344 = vmatpush3.bf16.msra.mxu0 %v1343_v0  ;;  %v172_v0 = vld [vmem:[%s2355_s1 + $0x4f0] sm:$0xff] }
  0x4b   :  { %1376 = vmatpush3.bf16.msra.mxu1 %v1375_v1  ;;  %1346 = vmatprep.subr.bf16.mxu0 %v1345_v10  ;;  %v173_v1 = vld [vmem:[%s2355_s1 + $0x4f8] sm:$0xff] }
  0x4c   :  { %1378 = vmatprep.subr.bf16.mxu1 %v1377_v11 }
  0x4e   :  { %1348 = vmatpush3.bf16.msra.mxu0 %v1347_v12 }
  0x4f   :  { %1380 = vmatpush3.bf16.msra.mxu1 %v1379_v13  ;;  %1350 = vmatprep.subr.bf16.mxu0 %v1349_v14 }
  0x50   :  { %1382 = vmatprep.subr.bf16.mxu1 %v1381_v18 }
  0x52   :  { %1352 = vmatpush3.bf16.msra.mxu0 %v1351_v25 }
  0x53   :  { %1384 = vmatpush3.bf16.msra.mxu1 %v1383_v26  ;;  %1354 = vmatprep.subr.bf16.mxu0 %v1353_v28 }
  0x54   :  { %1386 = vmatprep.subr.bf16.mxu1 %v1385_v33 }
  0x56   :  { %1356 = vmatpush3.bf16.msra.mxu0 %v1355_v40 }
  0x57   :  { %1388 = vmatpush3.bf16.msra.mxu1 %v1387_v41  ;;  %1358 = vmatprep.subr.bf16.mxu0 %v1357_v42 }
  0x58   :  { %1390 = vmatprep.subr.bf16.mxu1 %v1389_v47 }
  0x59   :  { %7 = vsyncpa [#allocation3], 0  ;;  %v204_v10 = vld [vmem:[%s2355_s1 + $0x5f0] sm:$0xff]  ;;  %v205_v2 = vld [vmem:[%s2355_s1 + $0x5f8] sm:$0xff]  ;;  %v1363_v3 = vpack.c.bf16 %v155_v59, %v154_v55  ;;  %v1395_v4 = vpack.c.bf16 %v187_v62, %v186_v60  ;;  %v1365_v11 = vpack.c.bf16 %v173_v1, %v172_v0  ;;  %v307_v28 = vrot.slane %v1968_v48, %v274_v39 }
  0x5a   :  { %1360 = vmatpush3.bf16.msra.mxu0 %v1359_v54  ;;  %v156_v5 = vld [vmem:[%s2355_s1 + $0x470] sm:$0xff]  ;;  %v157_v6 = vld [vmem:[%s2355_s1 + $0x478] sm:$0xff]  ;;  %v1397_v8 = vpack.c.bf16 %v205_v2, %v204_v10  ;;  %v222_v12 = vld [vmem:[%s2355_s1 + $0x680] sm:$0xff]  ;;  %v315_v33 = vrot.slane %v1968_v48, %v282_v43  ;;  %v327_v42 = vrot.slane %v1968_v48, %v294_v53  ;;  %v335_v46 = vrot.slane %v1968_v48, %v302_v57 }
  0x5b   :  { %1392 = vmatpush3.bf16.msra.mxu1 %v1391_v56  ;;  %1362 = vmatprep.subr.bf16.mxu0 %v1361_v58  ;;  %v188_v7 = vld [vmem:[%s2355_s1 + $0x570] sm:$0xff]  ;;  %v189_v9 = vld [vmem:[%s2355_s1 + $0x578] sm:$0xff]  ;;  %v223_v13 = vld [vmem:[%s2355_s1 + $0x688] sm:$0xff]  ;;  %v1367_v16 = vpack.c.bf16 %v157_v6, %v156_v5  ;;  %vm913_vm0 = vcmask 57344  }
  0x5c   :  { %1394 = vmatprep.subr.bf16.mxu1 %v1393_v63  ;;  %v254_v14 = vld [vmem:[%s2355_s1 + $0x780] sm:$0xff]  ;;  %v255_v15 = vld [vmem:[%s2355_s1 + $0x788] sm:$0xff]  ;;  %v1399_v17 = vpack.c.bf16 %v189_v9, %v188_v7  ;;  %v1401_v18 = vpack.c.bf16 %v223_v13, %v222_v12  ;;  %v224_v25 = vld [vmem:[%s2355_s1 + $0x690] sm:$0xff] }
  0x5d   :  { %v206_v19 = vld [vmem:[%s2355_s1 + $0x600] sm:$0xff]  ;;  %v207_v21 = vld [vmem:[%s2355_s1 + $0x608] sm:$0xff]  ;;  %v1433_v23 = vpack.c.bf16 %v255_v15, %v254_v14  ;;  %v225_v26 = vld [vmem:[%s2355_s1 + $0x698] sm:$0xff] }
  0x5e   :  { %1364 = vmatpush3.bf16.msra.mxu0 %v1363_v3  ;;  %v238_v22 = vld [vmem:[%s2355_s1 + $0x700] sm:$0xff]  ;;  %v239_v24 = vld [vmem:[%s2355_s1 + $0x708] sm:$0xff]  ;;  %v256_v29 = vld [vmem:[%s2355_s1 + $0x790] sm:$0xff]  ;;  %v1403_v32 = vpack.c.bf16 %v207_v21, %v206_v19  ;;  %v1405_v35 = vpack.c.bf16 %v225_v26, %v224_v25 }
  0x5f   :  { %1396 = vmatpush3.bf16.msra.mxu1 %v1395_v4  ;;  %1366 = vmatprep.subr.bf16.mxu0 %v1365_v11  ;;  %v257_v30 = vld [vmem:[%s2355_s1 + $0x798] sm:$0xff]  ;;  %v1435_v34 = vpack.c.bf16 %v239_v24, %v238_v22  ;;  %v208_v39 = vld [vmem:[%s2355_s1 + $0x610] sm:$0xff]  ;;  %v226_v40 = vld [vmem:[%s2355_s1 + $0x6a0] sm:$0xff] }
  0x60   :  { %1398 = vmatprep.subr.bf16.mxu1 %v1397_v8  ;;  %v209_v36 = vld [vmem:[%s2355_s1 + $0x618] sm:$0xff]  ;;  %v240_v37 = vld [vmem:[%s2355_s1 + $0x710] sm:$0xff]  ;;  %v1437_v38 = vpack.c.bf16 %v257_v30, %v256_v29  ;;  %v227_v41 = vld [vmem:[%s2355_s1 + $0x6a8] sm:$0xff] }
  0x61   :  { %v241_v43 = vld [vmem:[%s2355_s1 + $0x718] sm:$0xff]  ;;  %v258_v44 = vld [vmem:[%s2355_s1 + $0x7a0] sm:$0xff]  ;;  %v259_v45 = vld [vmem:[%s2355_s1 + $0x7a8] sm:$0xff]  ;;  %v1407_v47 = vpack.c.bf16 %v209_v36, %v208_v39  ;;  %v1409_v53 = vpack.c.bf16 %v227_v41, %v226_v40 }
  0x62   :  { %1368 = vmatpush3.bf16.msra.mxu0 %v1367_v16  ;;  %v1439_v49 = vpack.c.bf16 %v241_v43, %v240_v37  ;;  %v210_v50 = vld [vmem:[%s2355_s1 + $0x620] sm:$0xff]  ;;  %v211_v51 = vld [vmem:[%s2355_s1 + $0x628] sm:$0xff]  ;;  %v1441_v57 = vpack.c.bf16 %v259_v45, %v258_v44  ;;  %v228_v54 = vld [vmem:[%s2355_s1 + $0x6b0] sm:$0xff] }
  0x63   :  { %1400 = vmatpush3.bf16.msra.mxu1 %v1399_v17  ;;  %1402 = vmatprep.subr.bf16.mxu0 %v1401_v18  ;;  %v242_v52 = vld [vmem:[%s2355_s1 + $0x720] sm:$0xff]  ;;  %v243_v20 = vld [vmem:[%s2355_s1 + $0x728] sm:$0xff]  ;;  %v229_v55 = vld [vmem:[%s2355_s1 + $0x6b8] sm:$0xff]  ;;  %v1411_v59 = vpack.c.bf16 %v211_v51, %v210_v50 }
  0x64   :  { %1434 = vmatprep.subr.bf16.mxu1 %v1433_v23  ;;  %v260_v56 = vld [vmem:[%s2355_s1 + $0x7b0] sm:$0xff]  ;;  %v261_v58 = vld [vmem:[%s2355_s1 + $0x7b8] sm:$0xff]  ;;  %v1443_v60 = vpack.c.bf16 %v243_v20, %v242_v52  ;;  %v1413_v62 = vpack.c.bf16 %v229_v55, %v228_v54  ;;  %v230_v3 = vld [vmem:[%s2355_s1 + $0x6c0] sm:$0xff] }
  0x65   :  { %697 = vmatmul.mubr.f32.vlgmr.msra.gmra.mrb[4].mxu0 %v307_v28  ;;  %v212_v63 = vld [vmem:[%s2355_s1 + $0x630] sm:$0xff]  ;;  %v213_v0 = vld [vmem:[%s2355_s1 + $0x638] sm:$0xff]  ;;  %v1445_v10 = vpack.c.bf16 %v261_v58, %v260_v56  ;;  %v231_v4 = vld [vmem:[%s2355_s1 + $0x6c8] sm:$0xff]  ;;  %v323_v56 = vrot.slane %v1968_v48, %v290_v27  ;;  %v331_v58 = vrot.slane %v1968_v48, %v298_v31 }
  0x66   :  { %1404 = vmatpush3.bf16.msra.mxu0 %v1403_v32  ;;  %767 = vmatmul.mubr.f32.vlgmr.msra.gmra.mrb[4].mxu1 %v315_v33  ;;  %v244_v1 = vld [vmem:[%s2355_s1 + $0x730] sm:$0xff]  ;;  %v245_v2 = vld [vmem:[%s2355_s1 + $0x738] sm:$0xff]  ;;  %v262_v11 = vld [vmem:[%s2355_s1 + $0x7c0] sm:$0xff]  ;;  %v1415_v6 = vpack.c.bf16 %v213_v0, %v212_v63  ;;  %v1417_v8 = vpack.c.bf16 %v231_v4, %v230_v3 }
  0x67   :  { %1436 = vmatpush3.bf16.msra.mxu1 %v1435_v34  ;;  %1406 = vmatprep.subr.bf16.mxu0 %v1405_v35  ;;  %v263_v5 = vld [vmem:[%s2355_s1 + $0x7c8] sm:$0xff]  ;;  %v1447_v7 = vpack.c.bf16 %v245_v2, %v244_v1  ;;  %v214_v9 = vld [vmem:[%s2355_s1 + $0x640] sm:$0xff]  ;;  %v232_v16 = vld [vmem:[%s2355_s1 + $0x6d0] sm:$0xff] }
  0x68   :  { %1438 = vmatprep.subr.bf16.mxu1 %v1437_v38  ;;  %836 = vmatprep.mubr.f32.mxu0 %v327_v42  ;;  %v215_v12 = vld [vmem:[%s2355_s1 + $0x648] sm:$0xff]  ;;  %v246_v13 = vld [vmem:[%s2355_s1 + $0x740] sm:$0xff]  ;;  %v1449_v14 = vpack.c.bf16 %v263_v5, %v262_v11  ;;  %v233_v17 = vld [vmem:[%s2355_s1 + $0x6d8] sm:$0xff] }
  0x69   :  { %906 = vmatprep.mubr.f32.mxu1 %v335_v46  ;;  %v247_v15 = vld [vmem:[%s2355_s1 + $0x748] sm:$0xff]  ;;  %v264_v18 = vld [vmem:[%s2355_s1 + $0x7d0] sm:$0xff]  ;;  %v265_v19 = vld [vmem:[%s2355_s1 + $0x7d8] sm:$0xff]  ;;  %v1419_v21 = vpack.c.bf16 %v215_v12, %v214_v9  ;;  %v1421_v23 = vpack.c.bf16 %v233_v17, %v232_v16 }
  0x6a   :  { %1408 = vmatpush3.bf16.msra.mxu0 %v1407_v47  ;;  %v1451_v22 = vpack.c.bf16 %v247_v15, %v246_v13  ;;  %v216_v24 = vld [vmem:[%s2355_s1 + $0x650] sm:$0xff]  ;;  %v217_v25 = vld [vmem:[%s2355_s1 + $0x658] sm:$0xff]  ;;  %v1453_v28 = vpack.c.bf16 %v265_v19, %v264_v18  ;;  %v234_v30 = vld [vmem:[%s2355_s1 + $0x6e0] sm:$0xff] }
  0x6b   :  { %1440 = vmatpush3.bf16.msra.mxu1 %v1439_v49  ;;  %1410 = vmatprep.subr.bf16.mxu0 %v1409_v53  ;;  %v248_v26 = vld [vmem:[%s2355_s1 + $0x750] sm:$0xff]  ;;  %v249_v29 = vld [vmem:[%s2355_s1 + $0x758] sm:$0xff]  ;;  %v235_v32 = vld [vmem:[%s2355_s1 + $0x6e8] sm:$0xff]  ;;  %v1423_v35 = vpack.c.bf16 %v217_v25, %v216_v24 }
  0x6c   :  { %1442 = vmatprep.subr.bf16.mxu1 %v1441_v57  ;;  %v266_v33 = vld [vmem:[%s2355_s1 + $0x7e0] sm:$0xff]  ;;  %v267_v34 = vld [vmem:[%s2355_s1 + $0x7e8] sm:$0xff]  ;;  %v1455_v39 = vpack.c.bf16 %v249_v29, %v248_v26  ;;  %v1425_v36 = vpack.c.bf16 %v235_v32, %v234_v30  ;;  %v236_v42 = vld [vmem:[%s2355_s1 + $0x6f0] sm:$0xff] }
  0x6d   :  { %v218_v37 = vld [vmem:[%s2355_s1 + $0x660] sm:$0xff]  ;;  %v219_v38 = vld [vmem:[%s2355_s1 + $0x668] sm:$0xff]  ;;  %v1457_v40 = vpack.c.bf16 %v267_v34, %v266_v33  ;;  %v237_v44 = vld [vmem:[%s2355_s1 + $0x6f8] sm:$0xff] }
  0x6e   :  { %1412 = vmatpush3.bf16.msra.mxu0 %v1411_v59  ;;  %v250_v43 = vld [vmem:[%s2355_s1 + $0x760] sm:$0xff]  ;;  %v251_v41 = vld [vmem:[%s2355_s1 + $0x768] sm:$0xff]  ;;  %v268_v45 = vld [vmem:[%s2355_s1 + $0x7f0] sm:$0xff]  ;;  %v1427_v47 = vpack.c.bf16 %v219_v38, %v218_v37  ;;  %v1429_v53 = vpack.c.bf16 %v237_v44, %v236_v42 }
  0x6f   :  { %1444 = vmatpush3.bf16.msra.mxu1 %v1443_v60  ;;  %1414 = vmatprep.subr.bf16.mxu0 %v1413_v62  ;;  %v269_v46 = vld [vmem:[%s2355_s1 + $0x7f8] sm:$0xff]  ;;  %v1459_v49 = vpack.c.bf16 %v251_v41, %v250_v43  ;;  %v220_v50 = vld [vmem:[%s2355_s1 + $0x670] sm:$0xff] }
  0x70   :  { %1446 = vmatprep.subr.bf16.mxu1 %v1445_v10  ;;  %v221_v51 = vld [vmem:[%s2355_s1 + $0x678] sm:$0xff]  ;;  %v1461_v52 = vpack.c.bf16 %v269_v46, %v268_v45  ;;  %v252_v57 = vld [vmem:[%s2355_s1 + $0x770] sm:$0xff] }
  0x71   :  { %v253_v20 = vld [vmem:[%s2355_s1 + $0x778] sm:$0xff]  ;;  %v1431_v54 = vpack.c.bf16 %v221_v51, %v220_v50  ;;  %s1490_s1 = smov [#allocation2]  }
  0x72   :  { %1416 = vmatpush3.bf16.msra.mxu0 %v1415_v6  ;;  %v1463_v55 = vpack.c.bf16 %v253_v20, %v252_v57  ;;  %s921_s13 = sshll.u32 %s1490_s1, 4  ;;  %s922_s13 = int_to_ptr.vmem [resolvable:$true] %s921_s13 }
  0x73   :  { %1448 = vmatpush3.bf16.msra.mxu1 %v1447_v7  ;;  %1418 = vmatprep.subr.bf16.mxu0 %v1417_v8  ;;  %s1466_s14 = scalar_lea.vmem %s922_s13, 16  ;;  %s1470_s15 = scalar_lea.vmem %s922_s13, 32 }
  0x74   :  { %1450 = vmatprep.subr.bf16.mxu1 %v1449_v14  ;;  %p1467_p0 = scmp.ne.s32.totalorder %s922_s13, %s1466_s14  ;;  %p1471_p1 = scmp.lt.s32.totalorder %s922_s13, %s922_s13 }
  0x75   :  { %p1472_p2 = scmp.lt.s32.totalorder %s1470_s15, %s1466_s14 }
  0x76   :  { %1420 = vmatpush3.bf16.msra.mxu0 %v1419_v21 }
  0x77   :  { %1452 = vmatpush3.bf16.msra.mxu1 %v1451_v22  ;;  %1422 = vmatprep.subr.bf16.mxu0 %v1421_v23  ;;  %p1473_p3 = por %p1472_p2, %p1471_p1 }
  0x78   :  { %1454 = vmatprep.subr.bf16.mxu1 %v1453_v28 }
  0x79   :  { %p1474_p4 = pnand %p1473_p3, %p1467_p0 }
  0x7a   :  { %1424 = vmatpush3.bf16.msra.mxu0 %v1423_v35 }
  0x7b   :  { %1456 = vmatpush3.bf16.msra.mxu1 %v1455_v39  ;;  %1426 = vmatprep.subr.bf16.mxu0 %v1425_v36 }
  0x7c   :  { %1458 = vmatprep.subr.bf16.mxu1 %v1457_v40 }
  0x7e   :  { %1428 = vmatpush3.bf16.msra.mxu0 %v1427_v47 }
  0x7f   :  { %1460 = vmatpush3.bf16.msra.mxu1 %v1459_v49  ;;  %1430 = vmatprep.subr.bf16.mxu0 %v1429_v53 }
  0x80   :  { %1462 = vmatprep.subr.bf16.mxu1 %v1461_v52 }
  0x82   :  { %1432 = vmatpush3.bf16.msra.mxu0 %v1431_v54 }
  0x83   :  { %1464 = vmatpush3.bf16.msra.mxu1 %v1463_v55 }
  0x85   :  { %837 = vmatmul.mubr.f32.vlgmr.msra.gmra.mrb[6].mxu0 %v323_v56 }
  0x86   :  { %907 = vmatmul.mubr.f32.vlgmr.msra.gmra.mrb[6].mxu1 %v331_v58 }
  0xf8   :  { %v961_v59 = vpop.f32.mrb[0].mxu0 }
  0xf9   :  { %v996_v60 = vpop.f32.mrb[0].mxu1  ;;  %v962_v62 = vpop.f32.mrb[1].mxu0 }
  0xfa   :  { %v963_v63 = vadd.f32 %v962_v62, %v961_v59  ;;  %v997_v0 = vpop.f32.mrb[1].mxu1 }
  0xfb   :  { %v998_v1 = vadd.f32 %v997_v0, %v996_v60 }
  0xfd   :  { %v489_v10 = vadd.f32 %v998_v1, %v963_v63 }
 0x118   :  { %v1031_v2 = vpop.f32.mrb[2].mxu0 }
 0x119   :  { %v1032_v3 = vpop.f32.mrb[3].mxu0  ;;  %v1066_v4 = vpop.f32.mrb[2].mxu1 }
 0x11a   :  { %v1033_v11 = vadd.f32 %v1032_v3, %v1031_v2  ;;  %v1067_v27 = vpop.f32.mrb[3].mxu1 }
 0x11b   :  { %v1068_v5 = vadd.f32 %v1067_v27, %v1066_v4 }
 0x11c   :  { %v559_v6 = vadd.f32 %v1033_v11, %v489_v10 }
 0x11e   :  { %v629_v61 = vadd.f32 %v1068_v5, %v559_v6 }
 0x138   :  { %v1101_v7 = vpop.f32.mrb[4].mxu0 }
 0x139   :  { %v1102_v31 = vpop.f32.mrb[5].mxu0  ;;  %v1136_v48 = vpop.f32.mrb[4].mxu1 }
 0x13a   :  { %v1103_v8 = vadd.f32 %v1102_v31, %v1101_v7  ;;  %v1137_v9 = vpop.f32.mrb[5].mxu1 }
 0x13b   :  { %v1138_v12 = vadd.f32 %v1137_v9, %v1136_v48 }
 0x13c   :  { %v699_v13 = vadd.f32 %v1103_v8, %v629_v61 }
 0x13e   :  { %v769_v14 = vadd.f32 %v1138_v12, %v699_v13 }
 0x158   :  { %v1171_v15 = vpop.f32.mrb[6].mxu0 }
 0x159   :  { %v1172_v16 = vpop.f32.mrb[7].mxu0  ;;  %v1206_v17 = vpop.f32.mrb[6].mxu1 }
 0x15a   :  { %v1173_v18 = vadd.f32 %v1172_v16, %v1171_v15  ;;  %v1207_v19 = vpop.f32.mrb[7].mxu1 }
 0x15b   :  { %v1208_v21 = vadd.f32 %v1207_v19, %v1206_v17 }
 0x15c   :  { %v839_v22 = vadd.f32 %v1173_v18, %v769_v14 }
 0x15e   :  { %v909_v23 = vadd.f32 %v1208_v21, %v839_v22 }
 0x160   :  { %v912_v24 = vmul.f32 0.00390625, %v909_v23 }
 0x162   :  { %914 = vst.msk [vmem:[#allocation2] sm:$0x1] %vm913_vm0, %v912_v24 }
 0x163   :  { %1477 = shalt.err (!%p1474_p4)
}
 0x164   :  { %s1478_s18 = scalar_lea.hbm %s2356_s2, 16 }
 0x165   :  { %p1479_p5 = scmp.ne.s32.totalorder %s2356_s2, %s1478_s18  ;;  %p1482_p6 = scmp.lt.u32.totalorder %s1478_s18, %s2356_s2 }
 0x167   :  { %p1484_p7 = pnand %p1482_p6, %p1479_p5 }
 0x169   :  { %1487 = shalt.err (!%p1484_p7)
}
 0x16a   :  { %924 = dma.vmem_to_hbm [thread:$0]  %s922_s13, 16, %s2356_s2, [#allocation3]  }
 0x16b   :  { %1488 = dma.done.wait [#allocation3], 16  }
 0x16c   :  { %1489 = vsyncadd [#allocation3], 4294967280 }
 0x16d   :  { %928 = vsyncpa [#allocation3], 1 }

</bundles_post_ra>
